<compile_context>
chip_gen: v7x
topology: tpu7x:2x2x1
jax: 0.10.0
libtpu: 0.0.40
codegen_flags: <defaults>
</compile_context>

<pallas_src>
import functools
import numpy as np
import jax
import jax.numpy as jnp
from jax.experimental import pallas as pl
from jax.experimental.pallas import tpu as pltpu


# ----------------------------------------------------------------------------
# Pallas kernel: QNetNode forward for ONE BLOCK of Sb states (one grid step).
# Weights / state-invariant tensors are VMEM-resident (constant block index).
# ----------------------------------------------------------------------------
def qnet_kernel(ne0_ref, msg_b_ref, adj_ref, act_ref, lab_ref,
                conv_w_ref, l1_wg_ref, l1_wa_ref, lo_w_ref,
                pred_ref, idx_ref, *, max_lv, use_alt_action):
    f32 = jnp.float32

    ne0 = ne0_ref[...]                 # (N, D)  relu(input_message), state-invariant
    msg_b = msg_b_ref[...]             # (N, D)  input_message + conv_b
    adj = adj_ref[...]                 # (Sb, N, N)  f32 or bf16
    conv_w = conv_w_ref[...]           # (D, D)
    Sb, N, _ = adj.shape
    D = ne0.shape[1]

    # ---- graph embedding: max_lv rounds of message passing (static unroll) ----
    ne = None
    for lv in range(max_lv):
        if lv == 0:
            # level 0 rhs is state-invariant -> one big (Sb*N, N) @ (N, D) GEMM
            n2npool = jnp.dot(adj.reshape(Sb * N, N), ne0.astype(adj.dtype),
                              preferred_element_type=f32).reshape(Sb, N, D)
        else:
            n2npool = jnp.einsum('snm,smd->snd', adj, ne.astype(adj.dtype),
                                 preferred_element_type=f32)
        node_linear = jnp.dot(n2npool.reshape(Sb * N, D), conv_w,
                              preferred_element_type=f32).reshape(Sb, N, D)
        ne = jnp.maximum(node_linear + msg_b, 0.0)     # msg_b broadcasts over Sb
    if ne is None:                                     # max_lv == 0 edge case
        ne = jnp.broadcast_to(ne0, (Sb, N, D))

    graph_embed = jnp.mean(ne, axis=1)                                   # (Sb, D)
    graph_term = jnp.dot(graph_embed, l1_wg_ref[...],
                         preferred_element_type=f32)                     # (Sb, H)

    # label-branch MLP was hoisted to the glue; lab_ref already includes l1_b.
    lab_term = lab_ref[...]                                              # (Sb, 1, H)

    # ---- action branch ----
    if use_alt_action:
        # time_t == 2: action_embed @ l1_wa hoisted to the glue.
        act_term = act_ref[...]                                          # (Sb, A, H)
    else:
        # gather node_embed rows via one-hot selector (batched matmul).
        act_sel = act_ref[...]                                           # (Sb, A, N)
        action_embed = jnp.einsum('san,snd->sad', act_sel, ne,
                                  preferred_element_type=f32)            # (Sb, A, D)
        A = action_embed.shape[1]
        act_term = jnp.dot(action_embed.reshape(Sb * A, D), l1_wa_ref[...],
                           preferred_element_type=f32).reshape(Sb, A, -1)

    # ---- MLP head: concat folded into three GEMM terms ----
    h = jnp.maximum(graph_term[:, None, :] + lab_term + act_term, 0.0)   # (Sb, A, H)

    # linear_out as a VPU reduction; q laid out (Sb, A): actions on the lane axis.
    lo_w = lo_w_ref[...]                                                 # (1, H)
    q = jnp.sum(h * lo_w[None, :, :], axis=2)                            # (Sb, A)

    # ---- max / argmax over actions (lane reduction per state) ----
    num_actions = q.shape[1]
    m = jnp.max(q, axis=1)                                               # (Sb,)
    ids = jax.lax.broadcasted_iota(jnp.int32, q.shape, 1)
    idx = jnp.min(jnp.where(q >= m[:, None], ids, num_actions), axis=1)
    idx = jnp.minimum(idx, num_actions - 1)      # stay in range even if q has NaNs

    pred_ref[...] = m[None, :].astype(pred_ref.dtype)                    # (1, Sb)
    idx_ref[...] = idx[None, :].astype(jnp.int32)


def run_qnet_batched(params, ne0, msg_b, adj_stack, act_stack, lab_term_stack,
                     *, states_per_block, max_lv, use_alt_action):
    """One pallas_call over all states: grid=(S_pad // Sb,), Sb states per step."""
    S_pad = adj_stack.shape[0]
    Sb = states_per_block
    assert S_pad % Sb == 0
    G = S_pad // Sb

    kernel = functools.partial(qnet_kernel, max_lv=max_lv,
                               use_alt_action=use_alt_action)

    def resident(x):                     # whole array, same block every grid step
        zeros = (0,) * x.ndim
        return pl.BlockSpec(x.shape, lambda g: zeros)

    def per_block(x):                    # Sb states per step along the leading axis
        trail = (0,) * (x.ndim - 1)
        return pl.BlockSpec((Sb,) + x.shape[1:], lambda g: (g,) + trail)

    weights = (params["conv_w"], params["l1_wg"], params["l1_wa"], params["lo_w"])

    in_arrays = (ne0, msg_b, adj_stack, act_stack, lab_term_stack) + weights
    in_specs = ([resident(ne0), resident(msg_b),
                 per_block(adj_stack), per_block(act_stack),
                 per_block(lab_term_stack)]
                + [resident(w) for w in weights])

    # States on the lane axis of each output block: 2 writebacks per Sb states
    # instead of 2 per state.
    out_spec = pl.BlockSpec((None, 1, Sb), lambda g: (g, 0, 0))

    # TODO(synk): for large N set vmem_limit_bytes here (v5e/v6e) or tile/stream
    # the adj block over rows (v7x, 64 MiB VMEM) — see header comment.
    pred, idx = pl.pallas_call(
        kernel,
        grid=(G,),
        out_shape=(jax.ShapeDtypeStruct((G, 1, Sb), jnp.float32),
                   jax.ShapeDtypeStruct((G, 1, Sb), jnp.int32)),
        in_specs=in_specs,
        out_specs=(out_spec, out_spec),
        compiler_params=pltpu.CompilerParams(
            dimension_semantics=("parallel",)),   # shards state-blocks over v7x's 2 TCs
    )(*in_arrays)
    return pred, idx


# ----------------------------------------------------------------------------
# Plain-JAX glue (jitted): normalization, hoisted GEMMs, one-hot building.
# ----------------------------------------------------------------------------
def sym_normalize_adj(adj):
    # GraphNormTool.norm_extra ~ normalize_adj_tensor: D^-1/2 (A + I) D^-1/2
    # TODO(synk): exact GraphNormTool re-normalization chain kept as dense JAX glue.
    n = adj.shape[0]
    a = adj + jnp.eye(n, dtype=adj.dtype)
    d_inv_sqrt = 1.0 / jnp.sqrt(jnp.maximum(a.sum(axis=1), 1e-12))
    return a * d_inv_sqrt[:, None] * d_inv_sqrt[None, :]


@functools.partial(jax.jit, static_argnames=("num_classes", "embed_dim", "max_lv",
                                             "use_alt_action", "bf16_adj",
                                             "states_per_block"))
def _nstep_forward(params, node_features, extra_adj_stack, mod_labels_stack,
                   acts_stack, *, num_classes, embed_dim, max_lv,
                   use_alt_action, bf16_adj, states_per_block):
    f32 = jnp.float32
    S = extra_adj_stack.shape[0]          # already padded to a multiple of Sb
    N = node_features.shape[0]

    # State-invariant graph-embedding inputs, hoisted out of the kernel.
    input_message = jnp.dot(node_features, params["w_n2l"]) + params["b_n2l"]   # (N, D)
    ne0 = jnp.maximum(input_message, 0.0)
    msg_b = input_message + params["conv_b"]       # conv bias folded into the residual

    adj_stack = jax.vmap(sym_normalize_adj)(extra_adj_stack)                    # (S, N, N)
    if bf16_adj:
        # adj is consumed only by the MXU (f32 accumulation kept via
        # preferred_element_type); set bf16_adj=False for exact f32 parity.
        adj_stack = adj_stack.astype(jnp.bfloat16)

    # Label MLP hoisted to batched XLA GEMMs; linear_1 bias folded in here.
    lab_oh = jax.nn.one_hot(mod_labels_stack, num_classes,
                            dtype=f32).reshape(S, 1, -1)                        # (S,1,C*inj)
    x = jax.nn.relu(jnp.einsum('sik,kh->sih', lab_oh, params["le1_w"])
                    + params["le1_b"])
    label_embed = jax.nn.relu(jnp.einsum('sik,kd->sid', x, params["le2_w"])
                              + params["le2_b"])                                # (S,1,D)
    lab_term = (jnp.einsum('sid,dh->sih', label_embed, params["l1_wl"])
                + params["l1_b"])                                               # (S,1,H)

    if use_alt_action:
        # time_t == 2: padded label one-hot encoding; whole action branch hoisted.
        oh = jax.nn.one_hot(acts_stack, num_classes, dtype=f32)                 # (S, A, C)
        pad = jnp.zeros(oh.shape[:2] + (embed_dim - num_classes,), f32)
        action_embed = jnp.concatenate([oh, pad], axis=-1)                      # (S, A, D)
        act_stack = jnp.einsum('sad,dh->sah', action_embed, params["l1_wa"])    # (S, A, H)
    else:
        # one-hot node selector; the gather happens in-kernel against node_embed.
        # TODO(synk): scalar-prefetched int32 gather for large N (see header).
        act_stack = jax.nn.one_hot(acts_stack, N, dtype=f32)                    # (S, A, N)

    pred, idx = run_qnet_batched(params, ne0, msg_b, adj_stack, act_stack,
                                 lab_term, states_per_block=states_per_block,
                                 max_lv=max_lv, use_alt_action=use_alt_action)
    preds = pred.reshape(-1) + params["lo_b"][0, 0]    # add linear_out bias (argmax-safe)
    idxs = idx.reshape(-1)
    return preds, idxs


# ----------------------------------------------------------------------------
# Parameter init + NStepQNetNode-style module.
# ----------------------------------------------------------------------------
def glorot(key, shape, fan=None):
    if fan is not None:
        fan_in, fan_out = fan
    elif len(shape) == 2:
        fan_in, fan_out = shape
    else:
        fan_in = fan_out = int(np.prod(shape))
    limit = float(np.sqrt(6.0 / (fan_in + fan_out)))
    return jax.random.uniform(key, shape, jnp.float32, -limit, limit)


def make_qnet_params(key, feat_dim, embed_dim, mlp_hidden, num_classes, n_injected):
    ks = jax.random.split(key, 9)
    in_dim = num_classes * n_injected
    return {
        "w_n2l":  glorot(ks[0], (feat_dim, embed_dim)),
        # 1-D Parameter in torch -> fan_in = fan_out = embed_dim
        "b_n2l":  glorot(ks[1], (embed_dim,)).reshape(1, embed_dim),
        "conv_w": glorot(ks[2], (embed_dim, embed_dim)),
        "conv_b": jnp.zeros((1, embed_dim), jnp.float32),
        "le1_w":  glorot(ks[3], (in_dim, mlp_hidden)),
        "le1_b":  jnp.zeros((1, mlp_hidden), jnp.float32),
        "le2_w":  glorot(ks[4], (mlp_hidden, embed_dim)),
        "le2_b":  jnp.zeros((1, embed_dim), jnp.float32),
        # linear_1 weight (3*embed_dim, mlp_hidden) split into the concat segments
        # [graph | label | action]; keep the fused layer's glorot fan.
        "l1_wg":  glorot(ks[5], (embed_dim, mlp_hidden), fan=(mlp_hidden, 3 * embed_dim)),
        "l1_wl":  glorot(ks[6], (embed_dim, mlp_hidden), fan=(mlp_hidden, 3 * embed_dim)),
        "l1_wa":  glorot(ks[7], (embed_dim, mlp_hidden), fan=(mlp_hidden, 3 * embed_dim)),
        "l1_b":   jnp.zeros((1, mlp_hidden), jnp.float32),
        "lo_w":   glorot(ks[8], (1, mlp_hidden)),          # stored as a (1, H) row
        "lo_b":   jnp.zeros((1, 1), jnp.float32),
    }


class NStepQNetNodePallas:
    def __init__(self, key, num_steps, node_features, node_labels, n_injected,
                 embed_dim=32, mlp_hidden=32, max_lv=1, bf16_adj=True,
                 states_per_block=8):
        self.node_features = node_features
        self.num_classes = int(node_labels.max()) + 1
        assert embed_dim >= self.num_classes, \
            "embed_dim must be >= num_classes for the label-action padding branch"
        self.n_injected = n_injected
        self.embed_dim = embed_dim
        self.mlp_hidden = mlp_hidden
        self.max_lv = max_lv
        self.num_steps = num_steps
        self.bf16_adj = bf16_adj
        self.states_per_block = states_per_block
        keys = jax.random.split(key, num_steps)
        self.params = [
            make_qnet_params(keys[i], node_features.shape[1], embed_dim,
                             mlp_hidden, self.num_classes, n_injected)
            for i in range(num_steps)
        ]

    def forward(self, time_t, states, actions, greedy_acts=False):
        t = time_t % 3
        params = self.params[t]
        num_states = len(states)
        Sb = self.states_per_block
        S_pad = ((num_states + Sb - 1) // Sb) * Sb

        extra_adj = jnp.stack([a for a, _ in states]).astype(jnp.float32)
        mod_labels = jnp.stack([l for _, l in states])

        # Fixed action bucket (multiple of 8): one compiled kernel per bucket and
        # full sublanes in the head GEMM. Padding duplicates action 0, which never
        # changes max() or the first-max index.
        a_max = max(int(a.shape[0]) for a in actions)
        A_pad = max(8, -(-a_max // 8) * 8)
        padded = []
        for a in actions:
            a = jnp.asarray(a)
            if a.shape[0] < A_pad:
                a = jnp.concatenate(
                    [a, jnp.broadcast_to(a[0], (A_pad - a.shape[0],))])
            padded.append(a)
        acts = jnp.stack(padded)

        # Pad the state axis to a multiple of Sb (zero adj normalizes to identity,
        # so padded states stay finite; their outputs are sliced away below).
        if S_pad > num_states:
            ps = S_pad - num_states
            extra_adj = jnp.concatenate(
                [extra_adj, jnp.zeros((ps,) + extra_adj.shape[1:], extra_adj.dtype)], 0)
            mod_labels = jnp.concatenate(
                [mod_labels, jnp.zeros((ps,) + mod_labels.shape[1:], mod_labels.dtype)], 0)
            acts = jnp.concatenate(
                [acts, jnp.zeros((ps,) + acts.shape[1:], acts.dtype)], 0)

        preds, idxs = _nstep_forward(
            params, self.node_features, extra_adj, mod_labels, acts,
            num_classes=self.num_classes, embed_dim=self.embed_dim,
            max_lv=self.max_lv, use_alt_action=(t == 2), bf16_adj=self.bf16_adj,
            states_per_block=Sb)

        preds = preds[:num_states]                     # (num_states,)
        greedy_actions = []
        if greedy_acts:
            idx_host = np.asarray(idxs[:num_states])
            for i in range(num_states):
                greedy_actions.append(actions[i][int(idx_host[i])])
        return greedy_actions, preds


# ----------------------------------------------------------------------------
if __name__ == "__main__":
    key = jax.random.PRNGKey(0)
    N, F, D, H = 32, 16, 32, 32          # nodes, feat dim, embed_dim, mlp_hidden
    num_classes, n_injected = 4, 3
    A = 8                                # actions per state
    batch = 2
    num_steps = 3

    k_feat, k_lab, k_adj, k_act, k_param = jax.random.split(key, 5)
    node_features = jax.random.normal(k_feat, (N, F), jnp.float32)
    node_labels = jax.random.randint(k_lab, (N,), 0, num_classes)

    net = NStepQNetNodePallas(k_param, num_steps, node_features, node_labels,
                              n_injected, embed_dim=D, mlp_hidden=H, max_lv=1)

    # states: (extra adjacency, modified labels of the injected nodes)
    states, actions = [], []
    for i in range(batch):
        ka = jax.random.fold_in(k_adj, i)
        a = (jax.random.uniform(ka, (N, N)) < 0.1).astype(jnp.float32)
        a = jnp.maximum(a, a.T) * (1.0 - jnp.eye(N, dtype=jnp.float32))
        mod_labels = jax.random.randint(jax.random.fold_in(k_lab, i + 7),
                                        (n_injected,), 0, num_classes)
        acts = jax.random.randint(jax.random.fold_in(k_act, i), (A,), 0, N)
        states.append((a, mod_labels))
        actions.append(acts)

    # time_t = 0 -> action embeddings gathered from node embeddings
    g0, p0 = net.forward(0, states, actions, greedy_acts=True)
    # time_t = 2 -> action embeddings are padded one-hot label encodings
    acts_lbl = [jax.random.randint(jax.random.fold_in(k_act, 100 + i),
                                   (A,), 0, num_classes) for i in range(batch)]
    g2, p2 = net.forward(2, states, acts_lbl, greedy_acts=True)

    jax.block_until_ready(p0)
    jax.block_until_ready(p2)
    _ = [jax.block_until_ready(g) for g in g0 + g2]
    print("KERNEL_OK")
</pallas_src>

<mosaic_0001>
module attributes {stable_mosaic.version = 11 : i64} {
  func.func @qnet_kernel(%arg0: i32, %arg1: memref<32x32xf32, #tpu.memory_space<vmem>>, %arg2: memref<32x32xf32, #tpu.memory_space<vmem>>, %arg3: memref<8x32x32xbf16, #tpu.memory_space<vmem>>, %arg4: memref<8x8x32xf32, #tpu.memory_space<vmem>>, %arg5: memref<8x1x32xf32, #tpu.memory_space<vmem>>, %arg6: memref<32x32xf32, #tpu.memory_space<vmem>>, %arg7: memref<32x32xf32, #tpu.memory_space<vmem>>, %arg8: memref<32x32xf32, #tpu.memory_space<vmem>>, %arg9: memref<1x32xf32, #tpu.memory_space<vmem>>, %arg10: memref<1x1x8xf32, #tpu.memory_space<vmem>>, %arg11: memref<1x1x8xi32, #tpu.memory_space<vmem>>) attributes {dimension_semantics = [#tpu.dimension_semantics<parallel>], iteration_bounds = array<i64: 1>, scalar_prefetch = 0 : i64, scratch_operands = 0 : i64, tpu.core_type = #tpu.core_type<tc>, window_params = [{pipeline_mode = #tpu.pipeline_mode<synchronous>, transform_indices = @transform_0, window_bounds = array<i64: 32, 32>}, {pipeline_mode = #tpu.pipeline_mode<synchronous>, transform_indices = @transform_1, window_bounds = array<i64: 32, 32>}, {transform_indices = @transform_2, window_bounds = array<i64: 8, 32, 32>}, {transform_indices = @transform_3, window_bounds = array<i64: 8, 8, 32>}, {transform_indices = @transform_4, window_bounds = array<i64: 8, 1, 32>}, {pipeline_mode = #tpu.pipeline_mode<synchronous>, transform_indices = @transform_5, window_bounds = array<i64: 32, 32>}, {pipeline_mode = #tpu.pipeline_mode<synchronous>, transform_indices = @transform_6, window_bounds = array<i64: 32, 32>}, {pipeline_mode = #tpu.pipeline_mode<synchronous>, transform_indices = @transform_7, window_bounds = array<i64: 32, 32>}, {pipeline_mode = #tpu.pipeline_mode<synchronous>, transform_indices = @transform_8, window_bounds = array<i64: 1, 32>}, {transform_indices = @transform_9, window_bounds = array<i64: 1, 1, 8>}, {transform_indices = @transform_10, window_bounds = array<i64: 1, 1, 8>}]} {
    %c0 = arith.constant 0 : index
    %c0_0 = arith.constant 0 : index
    %0 = vector.load %arg1[%c0, %c0_0] : memref<32x32xf32, #tpu.memory_space<vmem>>, vector<32x32xf32>
    %c0_1 = arith.constant 0 : index
    %c0_2 = arith.constant 0 : index
    %1 = vector.load %arg2[%c0_1, %c0_2] : memref<32x32xf32, #tpu.memory_space<vmem>>, vector<32x32xf32>
    %c0_3 = arith.constant 0 : index
    %c0_4 = arith.constant 0 : index
    %c0_5 = arith.constant 0 : index
    %2 = vector.load %arg3[%c0_3, %c0_4, %c0_5] : memref<8x32x32xbf16, #tpu.memory_space<vmem>>, vector<8x32x32xbf16>
    %c0_6 = arith.constant 0 : index
    %c0_7 = arith.constant 0 : index
    %3 = vector.load %arg6[%c0_6, %c0_7] : memref<32x32xf32, #tpu.memory_space<vmem>>, vector<32x32xf32>
    %4 = vector.shape_cast %2 : vector<8x32x32xbf16> to vector<256x32xbf16>
    %5 = arith.truncf %0 : vector<32x32xf32> to vector<32x32xbf16>
    %cst = arith.constant dense<0.000000e+00> : vector<256x32xf32>
    %6 = tpu.matmul %4, %5, %cst {dimension_numbers = #tpu.dot_dimension_numbers<[1], [0], [0], [1], [0, 0, 1, 1], [], []>} : vector<256x32xbf16>, vector<32x32xbf16>, vector<256x32xf32> -> vector<256x32xf32>
    %7 = vector.shape_cast %6 : vector<256x32xf32> to vector<8x32x32xf32>
    %8 = vector.shape_cast %7 : vector<8x32x32xf32> to vector<256x32xf32>
    %cst_8 = arith.constant dense<0.000000e+00> : vector<256x32xf32>
    %9 = tpu.matmul %8, %3, %cst_8 {dimension_numbers = #tpu.dot_dimension_numbers<[1], [0], [0], [1], [0, 0, 1, 1], [], []>} : vector<256x32xf32>, vector<32x32xf32>, vector<256x32xf32> -> vector<256x32xf32>
    %10 = vector.shape_cast %9 : vector<256x32xf32> to vector<8x32x32xf32>
    %11 = vector.shape_cast %1 : vector<32x32xf32> to vector<1x32x32xf32>
    %12 = vector.broadcast %11 : vector<1x32x32xf32> to vector<8x32x32xf32>
    %13 = arith.addf %10, %12 : vector<8x32x32xf32>
    %cst_9 = arith.constant 0.000000e+00 : f32
    %14 = vector.broadcast %cst_9 : f32 to vector<8x32x32xf32>
    %15 = arith.maximumf %13, %14 : vector<8x32x32xf32>
    %cst_10 = arith.constant dense<0.000000e+00> : vector<8x32xf32>
    %16 = vector.multi_reduction <add>, %15, %cst_10 [1] : vector<8x32x32xf32> to vector<8x32xf32>
    %cst_11 = arith.constant 3.200000e+01 : f32
    %17 = vector.broadcast %cst_11 : f32 to vector<8x32xf32>
    %18 = arith.divf %16, %17 : vector<8x32xf32>
    %c0_12 = arith.constant 0 : index
    %c0_13 = arith.constant 0 : index
    %19 = vector.load %arg7[%c0_12, %c0_13] : memref<32x32xf32, #tpu.memory_space<vmem>>, vector<32x32xf32>
    %cst_14 = arith.constant dense<0.000000e+00> : vector<8x32xf32>
    %20 = tpu.matmul %18, %19, %cst_14 {dimension_numbers = #tpu.dot_dimension_numbers<[1], [0], [0], [1], [0, 0, 1, 1], [], []>} : vector<8x32xf32>, vector<32x32xf32>, vector<8x32xf32> -> vector<8x32xf32>
    %c0_15 = arith.constant 0 : index
    %c0_16 = arith.constant 0 : index
    %c0_17 = arith.constant 0 : index
    %21 = vector.load %arg5[%c0_15, %c0_16, %c0_17] : memref<8x1x32xf32, #tpu.memory_space<vmem>>, vector<8x1x32xf32>
    %c0_18 = arith.constant 0 : index
    %c0_19 = arith.constant 0 : index
    %c0_20 = arith.constant 0 : index
    %22 = vector.load %arg4[%c0_18, %c0_19, %c0_20] : memref<8x8x32xf32, #tpu.memory_space<vmem>>, vector<8x8x32xf32>
    "tpu.trace_start"() <{level = 10 : i32, message = "san,snd->sad"}> : () -> ()
    %cst_21 = arith.constant dense<0.000000e+00> : vector<8x8x32xf32>
    %23 = tpu.matmul %22, %15, %cst_21 {dimension_numbers = #tpu.dot_dimension_numbers<[2], [1], [1], [2], [0, 0, 0, 1, 1, 2], [0], [0]>} : vector<8x8x32xf32>, vector<8x32x32xf32>, vector<8x8x32xf32> -> vector<8x8x32xf32>
    "tpu.trace_stop"() : () -> ()
    %24 = vector.shape_cast %23 : vector<8x8x32xf32> to vector<64x32xf32>
    %c0_22 = arith.constant 0 : index
    %c0_23 = arith.constant 0 : index
    %25 = vector.load %arg8[%c0_22, %c0_23] : memref<32x32xf32, #tpu.memory_space<vmem>>, vector<32x32xf32>
    %cst_24 = arith.constant dense<0.000000e+00> : vector<64x32xf32>
    %26 = tpu.matmul %24, %25, %cst_24 {dimension_numbers = #tpu.dot_dimension_numbers<[1], [0], [0], [1], [0, 0, 1, 1], [], []>} : vector<64x32xf32>, vector<32x32xf32>, vector<64x32xf32> -> vector<64x32xf32>
    %27 = vector.shape_cast %26 : vector<64x32xf32> to vector<8x8x32xf32>
    %28 = vector.shape_cast %20 : vector<8x32xf32> to vector<8x1x32xf32>
    %29 = arith.addf %28, %21 : vector<8x1x32xf32>
    %30 = vector.broadcast %29 : vector<8x1x32xf32> to vector<8x8x32xf32>
    %31 = arith.addf %30, %27 : vector<8x8x32xf32>
    %cst_25 = arith.constant 0.000000e+00 : f32
    %32 = vector.broadcast %cst_25 : f32 to vector<8x8x32xf32>
    %33 = arith.maximumf %31, %32 : vector<8x8x32xf32>
    %c0_26 = arith.constant 0 : index
    %c0_27 = arith.constant 0 : index
    %34 = vector.load %arg9[%c0_26, %c0_27] : memref<1x32xf32, #tpu.memory_space<vmem>>, vector<1x32xf32>
    %35 = vector.shape_cast %34 : vector<1x32xf32> to vector<1x1x32xf32>
    %36 = vector.broadcast %35 : vector<1x1x32xf32> to vector<8x8x32xf32>
    %37 = arith.mulf %33, %36 : vector<8x8x32xf32>
    %cst_28 = arith.constant dense<0.000000e+00> : vector<8x8xf32>
    %38 = vector.multi_reduction <add>, %37, %cst_28 [2] : vector<8x8x32xf32> to vector<8x8xf32>
    %cst_29 = arith.constant dense<0xFF800000> : vector<8xf32>
    %39 = vector.multi_reduction <maximumf>, %38, %cst_29 [1] : vector<8x8xf32> to vector<8xf32>
    %40 = tpu.iota {dimensions = array<i32: 1>} : vector<8x8xi32>
    %41 = vector.shape_cast %39 : vector<8xf32> to vector<8x1xf32>
    %42 = vector.broadcast %41 : vector<8x1xf32> to vector<8x8xf32>
    %43 = arith.cmpf oge, %38, %42 : vector<8x8xf32>
    %c8_i32 = arith.constant 8 : i32
    %44 = vector.broadcast %c8_i32 : i32 to vector<8x8xi32>
    %45 = arith.select %43, %40, %44 : vector<8x8xi1>, vector<8x8xi32>
    %cst_30 = arith.constant dense<2147483647> : vector<8xi32>
    %46 = vector.multi_reduction <minsi>, %45, %cst_30 [1] : vector<8x8xi32> to vector<8xi32>
    %c7_i32 = arith.constant 7 : i32
    %47 = vector.broadcast %c7_i32 : i32 to vector<8xi32>
    %48 = arith.minsi %46, %47 : vector<8xi32>
    %49 = vector.shape_cast %39 : vector<8xf32> to vector<1x8xf32>
    %c0_31 = arith.constant 0 : index
    %c0_32 = arith.constant 0 : index
    %c0_33 = arith.constant 0 : index
    %50 = vector.load %arg10[%c0_31, %c0_32, %c0_33] : memref<1x1x8xf32, #tpu.memory_space<vmem>>, vector<1x1x8xf32>
    %51 = vector.shape_cast %50 : vector<1x1x8xf32> to vector<1x8xf32>
    %52 = vector.shape_cast %49 : vector<1x8xf32> to vector<1x1x8xf32>
    tpu.vector_store %arg10[%c0_31, %c0_32, %c0_33], %52 {strides = array<i32>} : memref<1x1x8xf32, #tpu.memory_space<vmem>>, vector<1x1x8xf32>,
    %53 = vector.shape_cast %48 : vector<8xi32> to vector<1x8xi32>
    %c0_34 = arith.constant 0 : index
    %c0_35 = arith.constant 0 : index
    %c0_36 = arith.constant 0 : index
    %54 = vector.load %arg11[%c0_34, %c0_35, %c0_36] : memref<1x1x8xi32, #tpu.memory_space<vmem>>, vector<1x1x8xi32>
    %55 = vector.shape_cast %54 : vector<1x1x8xi32> to vector<1x8xi32>
    %56 = vector.shape_cast %53 : vector<1x8xi32> to vector<1x1x8xi32>
    tpu.vector_store %arg11[%c0_34, %c0_35, %c0_36], %56 {strides = array<i32>} : memref<1x1x8xi32, #tpu.memory_space<vmem>>, vector<1x1x8xi32>,
    return
  }
  func.func @transform_0(%arg0: i32) -> (i32, i32) {
    %c0_i32 = arith.constant 0 : i32
    %c0_i32_0 = arith.constant 0 : i32
    %c0_i32_1 = arith.constant 0 : i32
    return %c0_i32, %c0_i32_0 : i32, i32
  }
  func.func @transform_1(%arg0: i32) -> (i32, i32) {
    %c0_i32 = arith.constant 0 : i32
    %c0_i32_0 = arith.constant 0 : i32
    %c0_i32_1 = arith.constant 0 : i32
    return %c0_i32, %c0_i32_0 : i32, i32
  }
  func.func @transform_2(%arg0: i32) -> (i32, i32, i32) {
    %c0_i32 = arith.constant 0 : i32
    %c0_i32_0 = arith.constant 0 : i32
    %c0_i32_1 = arith.constant 0 : i32
    return %arg0, %c0_i32, %c0_i32_0 : i32, i32, i32
  }
  func.func @transform_3(%arg0: i32) -> (i32, i32, i32) {
    %c0_i32 = arith.constant 0 : i32
    %c0_i32_0 = arith.constant 0 : i32
    %c0_i32_1 = arith.constant 0 : i32
    return %arg0, %c0_i32, %c0_i32_0 : i32, i32, i32
  }
  func.func @transform_4(%arg0: i32) -> (i32, i32, i32) {
    %c0_i32 = arith.constant 0 : i32
    %c0_i32_0 = arith.constant 0 : i32
    %c0_i32_1 = arith.constant 0 : i32
    return %arg0, %c0_i32, %c0_i32_0 : i32, i32, i32
  }
  func.func @transform_5(%arg0: i32) -> (i32, i32) {
    %c0_i32 = arith.constant 0 : i32
    %c0_i32_0 = arith.constant 0 : i32
    %c0_i32_1 = arith.constant 0 : i32
    return %c0_i32, %c0_i32_0 : i32, i32
  }
  func.func @transform_6(%arg0: i32) -> (i32, i32) {
    %c0_i32 = arith.constant 0 : i32
    %c0_i32_0 = arith.constant 0 : i32
    %c0_i32_1 = arith.constant 0 : i32
    return %c0_i32, %c0_i32_0 : i32, i32
  }
  func.func @transform_7(%arg0: i32) -> (i32, i32) {
    %c0_i32 = arith.constant 0 : i32
    %c0_i32_0 = arith.constant 0 : i32
    %c0_i32_1 = arith.constant 0 : i32
    return %c0_i32, %c0_i32_0 : i32, i32
  }
  func.func @transform_8(%arg0: i32) -> (i32, i32) {
    %c0_i32 = arith.constant 0 : i32
    %c0_i32_0 = arith.constant 0 : i32
    %c0_i32_1 = arith.constant 0 : i32
    return %c0_i32, %c0_i32_0 : i32, i32
  }
  func.func @transform_9(%arg0: i32) -> (i32, i32, i32) {
    %c0_i32 = arith.constant 0 : i32
    %c0_i32_0 = arith.constant 0 : i32
    %c0_i32_1 = arith.constant 0 : i32
    return %arg0, %c0_i32, %c0_i32_0 : i32, i32, i32
  }
  func.func @transform_10(%arg0: i32) -> (i32, i32, i32) {
    %c0_i32 = arith.constant 0 : i32
    %c0_i32_0 = arith.constant 0 : i32
    %c0_i32_1 = arith.constant 0 : i32
    return %arg0, %c0_i32, %c0_i32_0 : i32, i32, i32
  }
}

</mosaic_0001>

<bundles_post_ra>
// kernel: _nstep_forward.1
= control target key start
LH: loop header
LB: loop body
LE: loop exit
PB: predicated region body
PF: predicated region fallthrough
CT: control target
= control target key end

     0   :  { %vm162_vm0 = vcmask 261120   ;;  %s3129_s0 = inlined_call_operand.vmem [shape: f32[32,32], index: 0, kind: input, shape index: {}]   ;;  %s3130_s1 = inlined_call_operand.vmem [shape: f32[32,32], index: 1, kind: input, shape index: {}]   ;;  %s3131_s2 = inlined_call_operand.vmem [shape: bf16[8,32,32], index: 2, kind: input, shape index: {}]   ;;  %s3132_s3 = inlined_call_operand.vmem [shape: f32[8,8,32], index: 3, kind: input, shape index: {}]   ;;  %s3133_s4 = inlined_call_operand.vmem [shape: f32[8,1,32], index: 4, kind: input, shape index: {}]   ;;  %s3134_s5 = inlined_call_operand.vmem [shape: f32[32,32], index: 5, kind: input, shape index: {}]   ;;  %s3135_s6 = inlined_call_operand.vmem [shape: f32[32,32], index: 6, kind: input, shape index: {}]   ;;  %s3136_s7 = inlined_call_operand.vmem [shape: f32[32,32], index: 7, kind: input, shape index: {}]   ;;  %s3137_s8 = inlined_call_operand.vmem [shape: f32[1,32], index: 8, kind: input, shape index: {}]   ;;  %s3138_s9 = inlined_call_operand.vmem [shape: f32[1,1,8], index: 9, kind: output, shape index: {0}]   ;;  %s3139_s10 = inlined_call_operand.hbm [shape: s32[1,1,8], index: 10, kind: output, shape index: {1}]  }
   0x1   :  { %v36_v0 = vld [vmem:[%s3129_s0] sm:$0xff]  ;;  %v37_v1 = vld [vmem:[%s3129_s0 + $0x8] sm:$0xff]  ;;  %v38_v2 = vld [vmem:[%s3129_s0 + $0x10] sm:$0xff] }
   0x2   :  { %v80_v3 = vpack.c.bf16 %v37_v1, %v36_v0  ;;  %v39_v4 = vld [vmem:[%s3129_s0 + $0x18] sm:$0xff]  ;;  %v2576_v6 = vld [vmem:[%s3131_s2] sm:$0xff]   ;;  %v2577_v7 = vld [vmem:[%s3131_s2 + $0x8] sm:$0xff]  }
   0x3   :  { %v81_v5 = vpack.c.bf16 %v39_v4, %v38_v2  ;;  %2291 = vmatprep.mubr.msk.bf16.mxu0 %vm162_vm0, %v2576_v6  ;;  %v2578_v8 = vld [vmem:[%s3131_s2 + $0x10] sm:$0xff]   ;;  %v2579_v9 = vld [vmem:[%s3131_s2 + $0x18] sm:$0xff]   ;;  %v2580_v10 = vld [vmem:[%s3131_s2 + $0x20] sm:$0xff]  }
   0x4   :  { %2287 = vmatprep.subr.bf16.mxu0 %v80_v3  ;;  %v76_v11 = vld [vmem:[%s3134_s5] sm:$0xff]  ;;  %v77_v12 = vld [vmem:[%s3134_s5 + $0x8] sm:$0xff] }
   0x5   :  { %2288 = vmatpush3.bf16.msra.mxu0 %v80_v3  ;;  %v2498_v13 = vpack.c.bf16 %v77_v12, %v76_v11 }
   0x6   :  { %2289 = vmatprep.subr.bf16.mxu0 %v81_v5 }
   0x9   :  { %2290 = vmatpush3.bf16.msra.mxu0 %v81_v5 }
   0xc   :  { %2292 = vmatmul.mubr.msk.bf16.vlgmr.msra.gmra.mrb[0].mxu0 %vm162_vm0, %v2577_v7 }
   0xd   :  { %2295 = vmatprep.mubr.msk.bf16.mxu0 %vm162_vm0, %v2578_v8 }
   0xe   :  { %16 = vsyncpa [#allocation3], 0  ;;  %2499 = vmatprep.subr.bf16.mxu1 %v2498_v13  ;;  %v2581_v14 = vld [vmem:[%s3131_s2 + $0x28] sm:$0xff]   ;;  %v2582_v15 = vld [vmem:[%s3131_s2 + $0x30] sm:$0xff]   ;;  %v2616_v60 = vmov 0.0|0.0   ;;  %vm2617_vm1 = vmmov 0  }
   0xf   :  { %2501 = vmatpush3.bf16.msra.mxu1 %v2498_v13  ;;  %v2583_v16 = vld [vmem:[%s3131_s2 + $0x38] sm:$0xff]   ;;  %v2584_v17 = vld [vmem:[%s3131_s2 + $0x40] sm:$0xff]   ;;  %v2585_v18 = vld [vmem:[%s3131_s2 + $0x48] sm:$0xff]   ;;  %2506 = vmatprep.subr.bf16.mxu0 %v2616_v60  ;;  %v2618_v61 = vmov 0.0   ;;  %vm882_vm2 = vcmask 1041409   ;;  %vm884_vm3 = vcmask 1042434  }
  0x10   :  { %v2586_v19 = vld [vmem:[%s3131_s2 + $0x50] sm:$0xff]   ;;  %v2587_v20 = vld [vmem:[%s3131_s2 + $0x58] sm:$0xff]   ;;  %v2588_v21 = vld [vmem:[%s3131_s2 + $0x60] sm:$0xff]   ;;  %vm886_vm4 = vcmask 1043459   ;;  %vm888_vm5 = vcmask 1044484   ;;  %vm890_vm6 = vcmask 1045509  }
  0x11   :  { %v2589_v22 = vld [vmem:[%s3131_s2 + $0x68] sm:$0xff]   ;;  %v2590_v23 = vld [vmem:[%s3131_s2 + $0x70] sm:$0xff]   ;;  %v2591_v24 = vld [vmem:[%s3131_s2 + $0x78] sm:$0xff]   ;;  %vm892_vm7 = vcmask 1046534   ;;  %vm894_vm8 = vcmask 1047559   ;;  %vm1920_vm9 = vcmask 64512  }
  0x12   :  { %v78_v25 = vld [vmem:[%s3134_s5 + $0x10] sm:$0xff]  ;;  %v79_v26 = vld [vmem:[%s3134_s5 + $0x18] sm:$0xff]  ;;  %v870_v62 = vld [vmem:[%s3135_s6] sm:$0xff]  ;;  %vm2069_vm13 = vcmask 57344  }
  0x13   :  { %v2502_v27 = vpack.c.bf16 %v79_v26, %v78_v25  ;;  %v871_v63 = vld [vmem:[%s3135_s6 + $0x8] sm:$0xff]  ;;  %v872_v1 = vld [vmem:[%s3135_s6 + $0x10] sm:$0xff]  ;;  %v873_v2 = vld [vmem:[%s3135_s6 + $0x18] sm:$0xff] }
  0x14   :  { %2296 = vmatmul.mubr.msk.bf16.gmra.mrb[4].mxu0 %vm162_vm0, %v2579_v9  ;;  %v2507_v0 = vpack.c.bf16 %v871_v63, %v870_v62  ;;  %v2510_v3 = vpack.c.bf16 %v873_v2, %v872_v1  ;;  %v2820_v4 = vld [vmem:[%s3130_s1 + $0x8] sm:$0xff]  ;;  %v2825_v5 = vld [vmem:[%s3130_s1] sm:$0xff]  ;;  %v2837_v12 = vld [vmem:[%s3130_s1 + $0x10] sm:$0xff] }
  0x15   :  { %2299 = vmatprep.mubr.msk.bf16.mxu0 %vm162_vm0, %v2580_v10  ;;  %2503 = vmatprep.subr.bf16.mxu1 %v2502_v27  ;;  %v2832_v10 = vld [vmem:[%s3130_s1 + $0x18] sm:$0xff] }
  0x16   :  { %2505 = vmatpush3.bf16.msra.mxu1 %v2502_v27  ;;  %2508 = vmatpush3.bf16.msra.mxu0 %v2507_v0 }
  0x17   :  { %2524 = vmatprep.subr.bf16.mxu1 %v2616_v60  ;;  %2509 = vmatprep.subr.bf16.mxu0 %v2616_v60 }
  0x1a   :  { %2511 = vmatpush3.bf16.msra.mxu0 %v2510_v3 }
  0x1b   :  { %2512 = vmatprep.subr.bf16.mxu0 %v2616_v60 }
  0x1c   :  { %2300 = vmatmul.mubr.msk.bf16.gmra.mrb[8].mxu0 %vm162_vm0, %v2581_v14 }
  0x1d   :  { %2303 = vmatprep.mubr.msk.bf16.mxu0 %vm162_vm0, %v2582_v15 }
  0x24   :  { %2304 = vmatmul.mubr.msk.bf16.gmra.mrb[12].mxu0 %vm162_vm0, %v2583_v16 }
  0x25   :  { %2307 = vmatprep.mubr.msk.bf16.mxu0 %vm162_vm0, %v2584_v17 }
  0x2c   :  { %2308 = vmatmul.mubr.msk.bf16.gmra.mrb[16].mxu0 %vm162_vm0, %v2585_v18 }
  0x2d   :  { %2311 = vmatprep.mubr.msk.bf16.mxu0 %vm162_vm0, %v2586_v19 }
  0x34   :  { %2312 = vmatmul.mubr.msk.bf16.gmra.mrb[20].mxu0 %vm162_vm0, %v2587_v20 }
  0x35   :  { %2315 = vmatprep.mubr.msk.bf16.mxu0 %vm162_vm0, %v2588_v21 }
  0x3c   :  { %2316 = vmatmul.mubr.msk.bf16.gmra.mrb[24].mxu0 %vm162_vm0, %v2589_v22 }
  0x3d   :  { %2319 = vmatprep.mubr.msk.bf16.mxu0 %vm162_vm0, %v2590_v23 }
  0x44   :  { %2320 = vmatmul.mubr.msk.bf16.gmra.mrb[28].mxu0 %vm162_vm0, %v2591_v24 }
  0x45   :  { %2387 = vmatprep.mubr.msk.f32.mxu0 %vm2617_vm1, %v2618_v61 }
  0xdf   :  { %v2293_v28 = vpop.f32.mrb[0].mxu0 }
  0xe0   :  { %v245_v29 = vpop.f32.mrb[1].mxu0 }
  0xe1   :  { %v2294_v30 = vpop.f32.mrb[2].mxu0  ;;  %2331 = vmatprep.mubr.msk.f32.mxu1 %vm162_vm0, %v245_v29 }
  0xe2   :  { %v248_v31 = vpop.f32.mrb[3].mxu0 }
  0xe3   :  { %2332 = vmatmul.mubr.msk.f32.vlgmr.msra.gmra.mrb[0].mxu1 %vm162_vm0, %v248_v31 }
  0xe4   :  { %2334 = vmatprep.mubr.msk.f32.mxu1 %vm162_vm0, %v2293_v28 }
  0xe7   :  { %v2297_v32 = vpop.f32.mrb[4].mxu0  ;;  %2335 = vmatmul.mubr.msk.f32.gmra.mrb[2].mxu1 %vm162_vm0, %v2294_v30 }
  0xe8   :  { %v261_v33 = vpop.f32.mrb[5].mxu0 }
  0xe9   :  { %v2298_v34 = vpop.f32.mrb[6].mxu0  ;;  %2337 = vmatprep.mubr.msk.f32.mxu1 %vm162_vm0, %v261_v33 }
  0xea   :  { %v264_v35 = vpop.f32.mrb[7].mxu0 }
  0xeb   :  { %2338 = vmatmul.mubr.msk.f32.gmra.mrb[4].mxu1 %vm162_vm0, %v264_v35 }
  0xec   :  { %2340 = vmatprep.mubr.msk.f32.mxu1 %vm162_vm0, %v2297_v32 }
  0xef   :  { %v2301_v36 = vpop.f32.mrb[8].mxu0  ;;  %2341 = vmatmul.mubr.msk.f32.gmra.mrb[6].mxu1 %vm162_vm0, %v2298_v34 }
  0xf0   :  { %v277_v37 = vpop.f32.mrb[9].mxu0 }
  0xf1   :  { %v2302_v38 = vpop.f32.mrb[10].mxu0  ;;  %2343 = vmatprep.mubr.msk.f32.mxu1 %vm162_vm0, %v277_v37 }
  0xf2   :  { %v280_v39 = vpop.f32.mrb[11].mxu0 }
  0xf3   :  { %2344 = vmatmul.mubr.msk.f32.gmra.mrb[8].mxu1 %vm162_vm0, %v280_v39 }
  0xf4   :  { %2346 = vmatprep.mubr.msk.f32.mxu1 %vm162_vm0, %v2301_v36 }
  0xf7   :  { %v2305_v40 = vpop.f32.mrb[12].mxu0  ;;  %2347 = vmatmul.mubr.msk.f32.gmra.mrb[10].mxu1 %vm162_vm0, %v2302_v38 }
  0xf8   :  { %v293_v41 = vpop.f32.mrb[13].mxu0 }
  0xf9   :  { %v2306_v42 = vpop.f32.mrb[14].mxu0  ;;  %2349 = vmatprep.mubr.msk.f32.mxu1 %vm162_vm0, %v293_v41 }
  0xfa   :  { %v296_v43 = vpop.f32.mrb[15].mxu0 }
  0xfb   :  { %2350 = vmatmul.mubr.msk.f32.gmra.mrb[12].mxu1 %vm162_vm0, %v296_v43 }
  0xfc   :  { %2352 = vmatprep.mubr.msk.f32.mxu1 %vm162_vm0, %v2305_v40 }
  0xff   :  { %v2309_v44 = vpop.f32.mrb[16].mxu0  ;;  %2353 = vmatmul.mubr.msk.f32.gmra.mrb[14].mxu1 %vm162_vm0, %v2306_v42 }
 0x100   :  { %v309_v45 = vpop.f32.mrb[17].mxu0 }
 0x101   :  { %v2310_v46 = vpop.f32.mrb[18].mxu0  ;;  %2355 = vmatprep.mubr.msk.f32.mxu1 %vm162_vm0, %v309_v45 }
 0x102   :  { %v312_v47 = vpop.f32.mrb[19].mxu0 }
 0x103   :  { %2356 = vmatmul.mubr.msk.f32.gmra.mrb[16].mxu1 %vm162_vm0, %v312_v47 }
 0x104   :  { %2358 = vmatprep.mubr.msk.f32.mxu1 %vm162_vm0, %v2309_v44 }
 0x107   :  { %v2313_v48 = vpop.f32.mrb[20].mxu0  ;;  %2359 = vmatmul.mubr.msk.f32.gmra.mrb[18].mxu1 %vm162_vm0, %v2310_v46 }
 0x108   :  { %v325_v49 = vpop.f32.mrb[21].mxu0 }
 0x109   :  { %v2314_v50 = vpop.f32.mrb[22].mxu0  ;;  %2361 = vmatprep.mubr.msk.f32.mxu1 %vm162_vm0, %v325_v49 }
 0x10a   :  { %v328_v51 = vpop.f32.mrb[23].mxu0 }
 0x10b   :  { %2362 = vmatmul.mubr.msk.f32.gmra.mrb[20].mxu1 %vm162_vm0, %v328_v51 }
 0x10c   :  { %2364 = vmatprep.mubr.msk.f32.mxu1 %vm162_vm0, %v2313_v48 }
 0x10f   :  { %v2317_v52 = vpop.f32.mrb[24].mxu0  ;;  %2365 = vmatmul.mubr.msk.f32.gmra.mrb[22].mxu1 %vm162_vm0, %v2314_v50 }
 0x110   :  { %v341_v53 = vpop.f32.mrb[25].mxu0 }
 0x111   :  { %v2318_v54 = vpop.f32.mrb[26].mxu0  ;;  %2367 = vmatprep.mubr.msk.f32.mxu1 %vm162_vm0, %v341_v53 }
 0x112   :  { %v344_v55 = vpop.f32.mrb[27].mxu0 }
 0x113   :  { %2368 = vmatmul.mubr.msk.f32.gmra.mrb[24].mxu1 %vm162_vm0, %v344_v55 }
 0x114   :  { %2370 = vmatprep.mubr.msk.f32.mxu1 %vm162_vm0, %v2317_v52 }
 0x117   :  { %v2321_v56 = vpop.f32.mrb[28].mxu0  ;;  %2371 = vmatmul.mubr.msk.f32.gmra.mrb[26].mxu1 %vm162_vm0, %v2318_v54 }
 0x118   :  { %v357_v57 = vpop.f32.mrb[29].mxu0 }
 0x119   :  { %v2322_v58 = vpop.f32.mrb[30].mxu0  ;;  %2373 = vmatprep.mubr.msk.f32.mxu1 %vm162_vm0, %v357_v57 }
 0x11a   :  { %v360_v59 = vpop.f32.mrb[31].mxu0 }
 0x11b   :  { %2374 = vmatmul.mubr.msk.f32.gmra.mrb[28].mxu1 %vm162_vm0, %v360_v59 }
 0x11c   :  { %2376 = vmatprep.mubr.msk.f32.mxu1 %vm162_vm0, %v2321_v56 }
 0x11f   :  { %2377 = vmatmul.mubr.msk.f32.gmra.mrb[30].mxu1 %vm162_vm0, %v2322_v58 }
 0x120   :  { %2420 = vmatprep.mubr.msk.f32.mxu1 %vm2617_vm1, %v2618_v61 }
 0x1b6   :  { %v2333_v6 = vpop.f32.mrb[0].mxu1 }
 0x1b7   :  { %v694_v7 = vadd.f32 %v2333_v6, %v2820_v4  ;;  %v534_v8 = vpop.f32.mrb[1].mxu1 }
 0x1b8   :  { %v693_v9 = vadd.f32 %v534_v8, %v2825_v5 }
 0x1b9   :  { %v726_v11 = vmax.f32 %v694_v7, 0.0 }
 0x1ba   :  { %v725_v13 = vmax.f32 %v693_v9, 0.0  ;;  %v2336_v14 = vpop.f32.mrb[2].mxu1 }
 0x1bb   :  { %v758_v15 = vsel %vm162_vm0, %v726_v11, 0.0  ;;  %v696_v16 = vadd.f32 %v2336_v14, %v2832_v10  ;;  %v544_v17 = vpop.f32.mrb[3].mxu1 }
 0x1bc   :  { %v757_v18 = vsel %vm162_vm0, %v725_v13, 0.0  ;;  %v2842_v19 = vpack.c.bf16 %v726_v11, %v725_v13  ;;  %v695_v20 = vadd.f32 %v544_v17, %v2837_v12 }
 0x1bd   :  { %v759_v21 = vadd.f32 %v758_v15, %v757_v18  ;;  %v728_v22 = vmax.f32 %v696_v16, 0.0 }
 0x1be   :  { %v727_v23 = vmax.f32 %v695_v20, 0.0  ;;  %v2339_v24 = vpop.f32.mrb[4].mxu1 }
 0x1bf   :  { %v698_v25 = vadd.f32 %v2339_v24, %v2820_v4  ;;  %v554_v26 = vpop.f32.mrb[5].mxu1  ;;  %v762_v32 = vsel %vm162_vm0, %v728_v22, 0.0 }
 0x1c0   :  { %v760_v27 = vsel %vm162_vm0, %v727_v23, 0.0  ;;  %v2847_v28 = vpack.c.bf16 %v728_v22, %v727_v23  ;;  %v697_v29 = vadd.f32 %v554_v26, %v2825_v5 }
 0x1c1   :  { %v761_v30 = vadd.f32 %v760_v27, %v759_v21  ;;  %v730_v31 = vmax.f32 %v698_v25, 0.0 }
 0x1c2   :  { %v729_v33 = vmax.f32 %v697_v29, 0.0  ;;  %v2342_v34 = vpop.f32.mrb[6].mxu1  ;;  %v978_v29 = vld [vmem:[%s3132_s3 + $0x10] sm:$0xff] }
 0x1c3   :  { %v763_v35 = vadd.f32 %v762_v32, %v761_v30  ;;  %v771_v36 = vsel %vm162_vm0, %v730_v31, 0.0  ;;  %v700_v37 = vadd.f32 %v2342_v34, %v2832_v10  ;;  %v564_v38 = vpop.f32.mrb[7].mxu1 }
 0x1c4   :  { %v770_v39 = vsel %vm162_vm0, %v729_v33, 0.0  ;;  %v2854_v40 = vpack.c.bf16 %v730_v31, %v729_v33  ;;  %v699_v41 = vadd.f32 %v564_v38, %v2837_v12 }
 0x1c5   :  { %v764_v42 = vrot.slane %v763_v35, 4  ;;  %v772_v43 = vadd.f32 %v771_v36, %v770_v39  ;;  %v732_v44 = vmax.f32 %v700_v37, 0.0 }
 0x1c6   :  { %v731_v45 = vmax.f32 %v699_v41, 0.0  ;;  %v2345_v46 = vpop.f32.mrb[8].mxu1 }
 0x1c7   :  { %v765_v47 = vadd.f32 %v764_v42, %v763_v35  ;;  %v702_v48 = vadd.f32 %v2345_v46, %v2820_v4  ;;  %v574_v49 = vpop.f32.mrb[9].mxu1  ;;  %v775_v56 = vsel %vm162_vm0, %v732_v44, 0.0 }
 0x1c8   :  { %v773_v50 = vsel %vm162_vm0, %v731_v45, 0.0  ;;  %v2859_v51 = vpack.c.bf16 %v732_v44, %v731_v45  ;;  %v701_v52 = vadd.f32 %v574_v49, %v2825_v5 }
 0x1c9   :  { %v766_v53 = vrot.slane %v765_v47, 2  ;;  %v774_v54 = vadd.f32 %v773_v50, %v772_v43  ;;  %v734_v55 = vmax.f32 %v702_v48, 0.0 }
 0x1ca   :  { %v733_v57 = vmax.f32 %v701_v52, 0.0  ;;  %v2348_v58 = vpop.f32.mrb[10].mxu1 }
 0x1cb   :  { %v776_v59 = vadd.f32 %v775_v56, %v774_v54  ;;  %v784_v62 = vsel %vm162_vm0, %v734_v55, 0.0  ;;  %v704_v63 = vadd.f32 %v2348_v58, %v2832_v10  ;;  %v584_v0 = vpop.f32.mrb[11].mxu1  ;;  %v767_v1 = vadd.f32 %v766_v53, %v765_v47 }
 0x1cc   :  { %v783_v2 = vsel %vm162_vm0, %v733_v57, 0.0  ;;  %v2525_v3 = vpack.c.bf16 %v734_v55, %v733_v57  ;;  %v703_v6 = vadd.f32 %v584_v0, %v2837_v12 }
 0x1cd   :  { %v777_v7 = vrot.slane %v776_v59, 4  ;;  %v785_v8 = vadd.f32 %v784_v62, %v783_v2  ;;  %v736_v9 = vmax.f32 %v704_v63, 0.0  ;;  %v768_v17 = vrot.slane %v767_v1, 1 }
 0x1ce   :  { %v735_v11 = vmax.f32 %v703_v6, 0.0  ;;  %v2351_v13 = vpop.f32.mrb[12].mxu1  ;;  %2526 = vmatpush3.bf16.msra.mxu1 %v2525_v3 }
 0x1cf   :  { %v778_v14 = vadd.f32 %v777_v7, %v776_v59  ;;  %v706_v15 = vadd.f32 %v2351_v13, %v2820_v4  ;;  %v594_v16 = vpop.f32.mrb[13].mxu1  ;;  %2527 = vmatprep.subr.bf16.mxu1 %v2616_v60  ;;  %v788_v25 = vsel %vm162_vm0, %v736_v9, 0.0  ;;  %v769_v35 = vadd.f32 %v768_v17, %v767_v1 }
 0x1d0   :  { %v786_v18 = vsel %vm162_vm0, %v735_v11, 0.0  ;;  %v2528_v20 = vpack.c.bf16 %v736_v9, %v735_v11  ;;  %v705_v21 = vadd.f32 %v594_v16, %v2825_v5 }
 0x1d1   :  { %v779_v22 = vrot.slane %v778_v14, 2  ;;  %v787_v23 = vadd.f32 %v786_v18, %v785_v8  ;;  %v738_v24 = vmax.f32 %v706_v15, 0.0  ;;  %v862_v50 = vmul.f32 0.03125, %v769_v35  ;;  %v980_v35 = vld [vmem:[%s3132_s3 + $0x20] sm:$0xff] }
 0x1d2   :  { %v737_v26 = vmax.f32 %v705_v21, 0.0  ;;  %v2354_v27 = vpop.f32.mrb[14].mxu1  ;;  %2529 = vmatpush3.bf16.msra.mxu1 %v2528_v20 }
 0x1d3   :  { %v780_v30 = vadd.f32 %v779_v22, %v778_v14  ;;  %v789_v31 = vadd.f32 %v788_v25, %v787_v23  ;;  %v797_v32 = vsel %vm162_vm0, %v738_v24, 0.0  ;;  %v708_v33 = vadd.f32 %v2354_v27, %v2832_v10  ;;  %v604_v34 = vpop.f32.mrb[15].mxu1  ;;  %2536 = vmatprep.subr.bf16.mxu1 %v2616_v60 }
 0x1d4   :  { %v796_v36 = vsel %vm162_vm0, %v737_v26, 0.0  ;;  %v2879_v37 = vpack.c.bf16 %v738_v24, %v737_v26  ;;  %v707_v38 = vadd.f32 %v604_v34, %v2837_v12 }
 0x1d5   :  { %v781_v39 = vrot.slane %v780_v30, 1  ;;  %v790_v41 = vrot.slane %v789_v31, 4  ;;  %v798_v42 = vadd.f32 %v797_v32, %v796_v36  ;;  %v740_v43 = vmax.f32 %v708_v33, 0.0  ;;  %2421 = vmatmul.mubr.msk.f32.vlgmr.msra.gmra.mrb[32].mxu1 %vm162_vm0, %v978_v29 }
 0x1d6   :  { %v739_v44 = vmax.f32 %v707_v38, 0.0  ;;  %v2357_v45 = vpop.f32.mrb[16].mxu1  ;;  %2442 = vmatprep.mubr.msk.f32.mxu1 %vm2617_vm1, %v2618_v61 }
 0x1d7   :  { %v782_v46 = vadd.f32 %v781_v39, %v780_v30  ;;  %v791_v47 = vadd.f32 %v790_v41, %v789_v31  ;;  %v710_v48 = vadd.f32 %v2357_v45, %v2820_v4  ;;  %v614_v49 = vpop.f32.mrb[17].mxu1  ;;  %v801_v59 = vsel %vm162_vm0, %v740_v43, 0.0 }
 0x1d8   :  { %v799_v52 = vsel %vm162_vm0, %v739_v44, 0.0  ;;  %v2887_v53 = vpack.c.bf16 %v740_v43, %v739_v44  ;;  %v709_v54 = vadd.f32 %v614_v49, %v2825_v5 }
 0x1d9   :  { %v863_v55 = vmul.f32 0.03125, %v782_v46  ;;  %v792_v56 = vrot.slane %v791_v47, 2  ;;  %v800_v57 = vadd.f32 %v799_v52, %v798_v42  ;;  %v742_v58 = vmax.f32 %v710_v48, 0.0 }
 0x1da   :  { %v741_v62 = vmax.f32 %v709_v54, 0.0  ;;  %v2360_v63 = vpop.f32.mrb[18].mxu1 }
 0x1db   :  { %v883_v0 = vsel %vm882_vm2, %v863_v55, %v862_v50  ;;  %v793_v1 = vadd.f32 %v792_v56, %v791_v47  ;;  %v802_v2 = vadd.f32 %v801_v59, %v800_v57  ;;  %v810_v3 = vsel %vm162_vm0, %v742_v58, 0.0  ;;  %v624_v6 = vpop.f32.mrb[19].mxu1 }
 0x1dc   :  { %v809_v7 = vsel %vm162_vm0, %v741_v62, 0.0  ;;  %v2537_v8 = vpack.c.bf16 %v742_v58, %v741_v62  ;;  %v712_v9 = vadd.f32 %v2360_v63, %v2832_v10  ;;  %v711_v11 = vadd.f32 %v624_v6, %v2837_v12 }
 0x1dd   :  { %v794_v13 = vrot.slane %v793_v1, 1  ;;  %v803_v14 = vrot.slane %v802_v2, 4  ;;  %v811_v15 = vadd.f32 %v810_v3, %v809_v7 }
 0x1de   :  { %v744_v16 = vmax.f32 %v712_v9, 0.0  ;;  %v743_v17 = vmax.f32 %v711_v11, 0.0  ;;  %v2363_v18 = vpop.f32.mrb[20].mxu1  ;;  %2538 = vmatpush3.bf16.msra.mxu1 %v2537_v8 }
 0x1df   :  { %v795_v20 = vadd.f32 %v794_v13, %v793_v1  ;;  %v804_v21 = vadd.f32 %v803_v14, %v802_v2  ;;  %v714_v22 = vadd.f32 %v2363_v18, %v2820_v4  ;;  %v634_v23 = vpop.f32.mrb[21].mxu1  ;;  %2539 = vmatprep.subr.bf16.mxu1 %v2616_v60 }
 0x1e0   :  { %v812_v24 = vsel %vm162_vm0, %v743_v17, 0.0  ;;  %v2540_v25 = vpack.c.bf16 %v744_v16, %v743_v17  ;;  %v713_v26 = vadd.f32 %v634_v23, %v2825_v5  ;;  %v814_v32 = vsel %vm162_vm0, %v744_v16, 0.0 }
 0x1e1   :  { %v864_v27 = vmul.f32 0.03125, %v795_v20  ;;  %v805_v29 = vrot.slane %v804_v21, 2  ;;  %v813_v30 = vadd.f32 %v812_v24, %v811_v15  ;;  %v746_v31 = vmax.f32 %v714_v22, 0.0 }
 0x1e2   :  { %v745_v33 = vmax.f32 %v713_v26, 0.0  ;;  %v2366_v34 = vpop.f32.mrb[22].mxu1  ;;  %2541 = vmatpush3.bf16.msra.mxu1 %v2540_v25 }
 0x1e3   :  { %v885_v36 = vsel %vm884_vm3, %v864_v27, %v883_v0  ;;  %v806_v38 = vadd.f32 %v805_v29, %v804_v21  ;;  %v815_v39 = vadd.f32 %v814_v32, %v813_v30  ;;  %v823_v41 = vsel %vm162_vm0, %v746_v31, 0.0  ;;  %v644_v42 = vpop.f32.mrb[23].mxu1  ;;  %2548 = vmatprep.subr.bf16.mxu1 %v2616_v60 }
 0x1e4   :  { %v822_v43 = vsel %vm162_vm0, %v745_v33, 0.0  ;;  %v2908_v44 = vpack.c.bf16 %v746_v31, %v745_v33  ;;  %v716_v45 = vadd.f32 %v2366_v34, %v2832_v10  ;;  %v715_v46 = vadd.f32 %v644_v42, %v2837_v12 }
 0x1e5   :  { %v807_v47 = vrot.slane %v806_v38, 1  ;;  %v816_v48 = vrot.slane %v815_v39, 4  ;;  %v824_v49 = vadd.f32 %v823_v41, %v822_v43  ;;  %2443 = vmatmul.mubr.msk.f32.vlgmr.msra.gmra.mrb[34].mxu1 %vm162_vm0, %v980_v35 }
 0x1e6   :  { %v748_v50 = vmax.f32 %v716_v45, 0.0  ;;  %v747_v52 = vmax.f32 %v715_v46, 0.0  ;;  %v2369_v54 = vpop.f32.mrb[24].mxu1  ;;  %2464 = vmatprep.mubr.msk.f32.mxu1 %vm2617_vm1, %v2618_v61 }
 0x1e7   :  { %v808_v55 = vadd.f32 %v807_v47, %v806_v38  ;;  %v817_v56 = vadd.f32 %v816_v48, %v815_v39  ;;  %v718_v57 = vadd.f32 %v2369_v54, %v2820_v4  ;;  %v654_v58 = vpop.f32.mrb[25].mxu1 }
 0x1e8   :  { %v825_v59 = vsel %vm162_vm0, %v747_v52, 0.0  ;;  %v2917_v62 = vpack.c.bf16 %v748_v50, %v747_v52  ;;  %v717_v63 = vadd.f32 %v654_v58, %v2825_v5  ;;  %v827_v6 = vsel %vm162_vm0, %v748_v50, 0.0 }
 0x1e9   :  { %v865_v0 = vmul.f32 0.03125, %v808_v55  ;;  %v818_v1 = vrot.slane %v817_v56, 2  ;;  %v826_v2 = vadd.f32 %v825_v59, %v824_v49  ;;  %v750_v3 = vmax.f32 %v718_v57, 0.0 }
 0x1ea   :  { %v749_v7 = vmax.f32 %v717_v63, 0.0  ;;  %v2372_v8 = vpop.f32.mrb[26].mxu1 }
 0x1eb   :  { %v887_v9 = vsel %vm886_vm4, %v865_v0, %v885_v36  ;;  %v819_v11 = vadd.f32 %v818_v1, %v817_v56  ;;  %v828_v13 = vadd.f32 %v827_v6, %v826_v2  ;;  %v836_v14 = vsel %vm162_vm0, %v750_v3, 0.0  ;;  %v664_v15 = vpop.f32.mrb[27].mxu1 }
 0x1ec   :  { %v835_v16 = vsel %vm162_vm0, %v749_v7, 0.0  ;;  %v2549_v17 = vpack.c.bf16 %v750_v3, %v749_v7  ;;  %v720_v18 = vadd.f32 %v2372_v8, %v2832_v10  ;;  %v719_v20 = vadd.f32 %v664_v15, %v2837_v12 }
 0x1ed   :  { %v820_v21 = vrot.slane %v819_v11, 1  ;;  %v829_v22 = vrot.slane %v828_v13, 4  ;;  %v837_v23 = vadd.f32 %v836_v14, %v835_v16 }
 0x1ee   :  { %v752_v24 = vmax.f32 %v720_v18, 0.0  ;;  %v751_v25 = vmax.f32 %v719_v20, 0.0  ;;  %v2375_v26 = vpop.f32.mrb[28].mxu1  ;;  %2550 = vmatpush3.bf16.msra.mxu1 %v2549_v17 }
 0x1ef   :  { %v821_v27 = vadd.f32 %v820_v21, %v819_v11  ;;  %v830_v29 = vadd.f32 %v829_v22, %v828_v13  ;;  %v722_v30 = vadd.f32 %v2375_v26, %v2820_v4  ;;  %v674_v31 = vpop.f32.mrb[29].mxu1  ;;  %2551 = vmatprep.subr.bf16.mxu1 %v2616_v60  ;;  %v982_v4 = vld [vmem:[%s3132_s3 + $0x30] sm:$0xff] }
 0x1f0   :  { %v838_v32 = vsel %vm162_vm0, %v751_v25, 0.0  ;;  %v2552_v33 = vpack.c.bf16 %v752_v24, %v751_v25  ;;  %v721_v34 = vadd.f32 %v674_v31, %v2825_v5  ;;  %v840_v41 = vsel %vm162_vm0, %v752_v24, 0.0  ;;  %v976_v25 = vld [vmem:[%s3132_s3] sm:$0xff] }
 0x1f1   :  { %v866_v35 = vmul.f32 0.03125, %v821_v27  ;;  %v831_v36 = vrot.slane %v830_v29, 2  ;;  %v839_v38 = vadd.f32 %v838_v32, %v837_v23  ;;  %v754_v39 = vmax.f32 %v722_v30, 0.0 }
 0x1f2   :  { %v753_v42 = vmax.f32 %v721_v34, 0.0  ;;  %v2378_v43 = vpop.f32.mrb[30].mxu1  ;;  %2553 = vmatpush3.bf16.msra.mxu1 %v2552_v33 }
 0x1f3   :  { %v832_v45 = vadd.f32 %v831_v36, %v830_v29  ;;  %v841_v46 = vadd.f32 %v840_v41, %v839_v38  ;;  %v849_v47 = vsel %vm162_vm0, %v754_v39, 0.0  ;;  %v724_v5 = vadd.f32 %v2378_v43, %v2832_v10  ;;  %v684_v48 = vpop.f32.mrb[31].mxu1 }
 0x1f4   :  { %v848_v49 = vsel %vm162_vm0, %v753_v42, 0.0  ;;  %v2937_v50 = vpack.c.bf16 %v754_v39, %v753_v42  ;;  %v723_v52 = vadd.f32 %v684_v48, %v2837_v12  ;;  %v889_v54 = vsel %vm888_vm5, %v866_v35, %v887_v9 }
 0x1f5   :  { %v833_v55 = vrot.slane %v832_v45, 1  ;;  %v842_v56 = vrot.slane %v841_v46, 4  ;;  %v850_v57 = vadd.f32 %v849_v47, %v848_v49  ;;  %v756_v58 = vmax.f32 %v724_v5, 0.0  ;;  %2465 = vmatmul.mubr.msk.f32.vlgmr.msra.gmra.mrb[36].mxu1 %vm162_vm0, %v982_v4 }
 0x1f6   :  { %v755_v59 = vmax.f32 %v723_v52, 0.0  ;;  %v2619_v47 = vmov 1966171168   ;;  %v1706_v48 = vlaneseq }
 0x1f7   :  { %v834_v63 = vadd.f32 %v833_v55, %v832_v45  ;;  %v843_v0 = vadd.f32 %v842_v56, %v841_v46  ;;  %v853_v12 = vsel %vm162_vm0, %v756_v58, 0.0  ;;  %v1704_v5 = vunpack.c.l.s4 %v2619_v47 }
 0x1f8   :  { %v851_v10 = vsel %vm162_vm0, %v755_v59, 0.0  ;;  %v2558_v1 = vpack.c.bf16 %v756_v58, %v755_v59  ;;  %v969_v58 = vld [vmem:[%s3133_s4 + $0x1] sm:$0x1]  ;;  %v968_v59 = vld [vmem:[%s3133_s4] sm:$0x1] }
 0x1f9   :  { %v867_v2 = vmul.f32 0.03125, %v834_v63  ;;  %v844_v3 = vrot.slane %v843_v0, 2  ;;  %v852_v6 = vadd.f32 %v851_v10, %v850_v57  ;;  %v1705_v49 = vunpack.c.0.s8 %v1704_v5 }
 0x1fb   :  { %v845_v7 = vadd.f32 %v844_v3, %v843_v0  ;;  %v854_v8 = vadd.f32 %v853_v12, %v852_v6  ;;  %v891_v9 = vsel %vm890_vm6, %v867_v2, %v889_v54 }
 0x1fd   :  { %v846_v11 = vrot.slane %v845_v7, 1  ;;  %v855_v13 = vrot.slane %v854_v8, 4 }
 0x1ff   :  { %v847_v14 = vadd.f32 %v846_v11, %v845_v7  ;;  %v856_v15 = vadd.f32 %v855_v13, %v854_v8 }
 0x201   :  { %v868_v16 = vmul.f32 0.03125, %v847_v14  ;;  %v857_v17 = vrot.slane %v856_v15, 2  ;;  %v970_v14 = vld [vmem:[%s3133_s4 + $0x2] sm:$0x1] }
 0x203   :  { %v858_v18 = vadd.f32 %v857_v17, %v856_v15  ;;  %v893_v20 = vsel %vm892_vm7, %v868_v16, %v891_v9  ;;  %v971_v9 = vld [vmem:[%s3133_s4 + $0x3] sm:$0x1]  ;;  %v2175_v16 = vld [vmem:[%s3137_s8] ss:$0 sm:$0xff] }
 0x205   :  { %v859_v21 = vrot.slane %v858_v18, 1 }
 0x207   :  { %v860_v22 = vadd.f32 %v859_v21, %v858_v18 }
 0x209   :  { %v869_v23 = vmul.f32 0.03125, %v860_v22 }
 0x20b   :  { %v895_v24 = vsel %vm894_vm8, %v869_v23, %v893_v20 }
 0x20c   :  { %2388 = vmatmul.mubr.msk.f32.vlgmr.msra.gmra.mrb[32].mxu0 %vm162_vm0, %v895_v24 }
 0x20d   :  { %2514 = vmatpush3.bf16.msra.mxu0 %v2842_v19  ;;  %2398 = vmatprep.mubr.msk.f32.mxu0 %vm2617_vm1, %v2618_v61  ;;  %v977_v19 = vld [vmem:[%s3132_s3 + $0x8] sm:$0xff] }
 0x20e   :  { %2515 = vmatprep.subr.bf16.mxu0 %v2616_v60 }
 0x211   :  { %2517 = vmatpush3.bf16.msra.mxu0 %v2847_v28  ;;  %v979_v28 = vld [vmem:[%s3132_s3 + $0x18] sm:$0xff] }
 0x212   :  { %2518 = vmatprep.subr.bf16.mxu0 %v2616_v60 }
 0x214   :  { %2399 = vmatmul.mubr.msk.f32.vlgmr.msra.gmra.mrb[34].mxu0 %vm162_vm0, %v976_v25 }
 0x215   :  { %2520 = vmatpush3.bf16.msra.mxu0 %v2854_v40  ;;  %2409 = vmatprep.mubr.msk.f32.mxu0 %vm2617_vm1, %v2618_v61  ;;  %v981_v40 = vld [vmem:[%s3132_s3 + $0x28] sm:$0xff] }
 0x216   :  { %2521 = vmatprep.subr.bf16.mxu0 %v2616_v60 }
 0x219   :  { %2523 = vmatpush3.bf16.msra.mxu0 %v2859_v51  ;;  %v983_v51 = vld [vmem:[%s3132_s3 + $0x38] sm:$0xff] }
 0x21a   :  { %2530 = vmatprep.subr.bf16.mxu0 %v2616_v60 }
 0x21c   :  { %2410 = vmatmul.mubr.msk.f32.vlgmr.msra.gmra.mrb[36].mxu0 %vm162_vm0, %v977_v19 }
 0x21d   :  { %2532 = vmatpush3.bf16.msra.mxu0 %v2879_v37  ;;  %2431 = vmatprep.mubr.msk.f32.mxu0 %vm2617_vm1, %v2618_v61  ;;  %v1568_v37 = vld [vmem:[%s3136_s7] sm:$0xff] }
 0x21e   :  { %2533 = vmatprep.subr.bf16.mxu0 %v2616_v60 }
 0x221   :  { %2535 = vmatpush3.bf16.msra.mxu0 %v2887_v53  ;;  %v1569_v53 = vld [vmem:[%s3136_s7 + $0x8] sm:$0xff] }
 0x222   :  { %2542 = vmatprep.subr.bf16.mxu0 %v2616_v60 }
 0x224   :  { %2432 = vmatmul.mubr.msk.f32.vlgmr.msra.gmra.mrb[38].mxu0 %vm162_vm0, %v979_v28 }
 0x225   :  { %2544 = vmatpush3.bf16.msra.mxu0 %v2908_v44  ;;  %2453 = vmatprep.mubr.msk.f32.mxu0 %vm2617_vm1, %v2618_v61  ;;  %v2560_v44 = vpack.c.bf16 %v1569_v53, %v1568_v37  ;;  %v973_v53 = vld [vmem:[%s3133_s4 + $0x5] sm:$0x1] }
 0x226   :  { %2545 = vmatprep.subr.bf16.mxu0 %v2616_v60 }
 0x227   :  { %2561 = vmatprep.subr.bf16.mxu1 %v2560_v44 }
 0x228   :  { %2563 = vmatpush3.bf16.msra.mxu1 %v2560_v44 }
 0x229   :  { %2547 = vmatpush3.bf16.msra.mxu0 %v2917_v62 }
 0x22a   :  { %2554 = vmatprep.subr.bf16.mxu0 %v2616_v60 }
 0x22c   :  { %2454 = vmatmul.mubr.msk.f32.vlgmr.msra.gmra.mrb[40].mxu0 %vm162_vm0, %v981_v40 }
 0x22d   :  { %2556 = vmatpush3.bf16.msra.mxu0 %v2937_v50  ;;  %2475 = vmatprep.mubr.msk.f32.mxu0 %vm2617_vm1, %v2618_v61  ;;  %v1571_v61 = vld [vmem:[%s3136_s7 + $0x18] sm:$0xff]  ;;  %v3017_v50 = vshrl.u32 %v1706_v48, 7 }
 0x22e   :  { %2557 = vmatprep.subr.bf16.mxu0 %v2616_v60  ;;  %v1570_v60 = vld [vmem:[%s3136_s7 + $0x10] sm:$0xff] }
 0x22f   :  { %v2564_v62 = vpack.c.bf16 %v1571_v61, %v1570_v60  ;;  %v1708_v52 = vsub.s32 %v1705_v49, %v3017_v50  ;;  %v3027_v10 = vsub.s32 0, %v3017_v50  ;;  %v972_v61 = vld [vmem:[%s3133_s4 + $0x4] sm:$0x1] }
 0x231   :  { %2559 = vmatpush3.bf16.msra.mxu0 %v2558_v1  ;;  %2565 = vmatprep.subr.bf16.mxu1 %v2564_v62 }
 0x232   :  { %2567 = vmatpush3.bf16.msra.mxu1 %v2564_v62 }
 0x234   :  { %2476 = vmatmul.mubr.msk.f32.vlgmr.msra.gmra.mrb[42].mxu0 %vm162_vm0, %v983_v51 }
 0x2a8   :  { %v1199_v26 = vpop.f32.mrb[32].mxu1 }
 0x2a9   :  { %v2422_v27 = vpop.f32.mrb[33].mxu1 }
 0x2b8   :  { %v1345_v29 = vpop.f32.mrb[34].mxu1 }
 0x2b9   :  { %v2444_v30 = vpop.f32.mrb[35].mxu1 }
 0x2c8   :  { %v1491_v31 = vpop.f32.mrb[36].mxu1 }
 0x2c9   :  { %v2466_v32 = vpop.f32.mrb[37].mxu1 }
 0x2df   :  { %v964_v33 = vpop.f32.mrb[32].mxu0 }
 0x2e0   :  { %v2389_v34 = vpop.f32.mrb[33].mxu0  ;;  %v1709_v54 = vrot.slane %v964_v33, %v1708_v52  ;;  %v1702_v63 = vcombine.high %v964_v33, %v964_v33 }
 0x2e2   :  { %v1717_v55 = vcombine.high %v1709_v54, %v1709_v54  ;;  %v1725_v57 = vrot.slane %v1709_v54, %v1708_v52  ;;  %v1716_v2 = vrot.slane %v1702_v63, %v1708_v52 }
 0x2e4   :  { %v1739_v56 = vrot.slane %v1717_v55, %v1708_v52  ;;  %v1759_v1 = vadd.f32 %v1725_v57, %v968_v59  ;;  %v1747_v12 = vcombine.high %v1725_v57, %v1725_v57  ;;  %v1718_v17 = vcombine.high %v1716_v2, %v1716_v2 }
 0x2e5   :  { %v1732_v40 = vrot.slane %v1716_v2, %v1708_v52 }
 0x2e6   :  { %v1760_v0 = vadd.f32 %v1739_v56, %v969_v58  ;;  %v1749_v6 = vcombine.high %v1739_v56, %v1739_v56  ;;  %v1778_v8 = vrot.slane %v1759_v1, %v3027_v10  ;;  %v1761_v22 = vadd.f32 %v1747_v12, %v970_v14 }
 0x2e7   :  { %v1053_v35 = vpop.f32.mrb[34].mxu0  ;;  %v1746_v28 = vrot.slane %v1718_v17, %v1708_v52 }
 0x2e8   :  { %v2400_v36 = vpop.f32.mrb[35].mxu0  ;;  %2486 = vmatprep.mubr.msk.f32.mxu1 %vm162_vm0, %v1053_v35  ;;  %v1782_v3 = vrot.slane %v1760_v0, %v3027_v10  ;;  %v1762_v20 = vadd.f32 %v1749_v6, %v971_v9  ;;  %v1786_v37 = vrot.slane %v1761_v22, %v3027_v10 }
 0x2e9   :  { %v1750_v36 = vcombine.high %v1746_v28, %v1746_v28 }
 0x2ea   :  { %v1790_v25 = vrot.slane %v1762_v20, %v3027_v10 }
 0x2ef   :  { %v1126_v38 = vpop.f32.mrb[36].mxu0 }
 0x2f0   :  { %v2411_v39 = vpop.f32.mrb[37].mxu0  ;;  %2487 = vmatmul.mubr.msk.f32.vlgmr.msra.gmra.mrb[38].mxu1 %vm162_vm0, %v1126_v38 }
 0x2f1   :  { %2489 = vmatprep.mubr.msk.f32.mxu1 %vm162_vm0, %v1199_v26 }
 0x2f7   :  { %v1272_v41 = vpop.f32.mrb[38].mxu0 }
 0x2f8   :  { %v2433_v42 = vpop.f32.mrb[39].mxu0  ;;  %2490 = vmatmul.mubr.msk.f32.gmra.mrb[40].mxu1 %vm162_vm0, %v1272_v41  ;;  %v975_v41 = vld [vmem:[%s3133_s4 + $0x7] sm:$0x1] }
 0x2f9   :  { %2492 = vmatprep.mubr.msk.f32.mxu1 %vm162_vm0, %v1345_v29  ;;  %v1764_v29 = vadd.f32 %v1746_v28, %v973_v53  ;;  %v1748_v42 = vcombine.high %v1732_v40, %v1732_v40  ;;  %v1766_v49 = vadd.f32 %v1750_v36, %v975_v41 }
 0x2fb   :  { %v1798_v34 = vrot.slane %v1764_v29, %v3027_v10  ;;  %v1806_v58 = vrot.slane %v1766_v49, %v3027_v10 }
 0x2ff   :  { %v1418_v43 = vpop.f32.mrb[40].mxu0 }
 0x300   :  { %v2455_v4 = vpop.f32.mrb[41].mxu0  ;;  %2493 = vmatmul.mubr.msk.f32.gmra.mrb[42].mxu1 %vm162_vm0, %v1418_v43 }
 0x301   :  { %2495 = vmatprep.mubr.msk.f32.mxu1 %vm162_vm0, %v1491_v31  ;;  %v1763_v31 = vadd.f32 %v1732_v40, %v972_v61 }
 0x303   :  { %v1794_v39 = vrot.slane %v1763_v31, %v3027_v10  ;;  %v1931_v31 = vsub.s32 1, %v3017_v50 }
 0x307   :  { %v1564_v45 = vpop.f32.mrb[42].mxu0 }
 0x308   :  { %v2477_v46 = vpop.f32.mrb[43].mxu0  ;;  %2496 = vmatmul.mubr.msk.f32.gmra.mrb[44].mxu1 %vm162_vm0, %v1564_v45  ;;  %v974_v45 = vld [vmem:[%s3133_s4 + $0x6] sm:$0x1] }
 0x309   :  { %v1765_v54 = vadd.f32 %v1748_v42, %v974_v45 }
 0x30b   :  { %v1802_v0 = vrot.slane %v1765_v54, %v3027_v10 }
 0x3c3   :  { %v2488_v7 = vpop.f32.mrb[38].mxu1 }
 0x3c4   :  { %v1816_v11 = vadd.f32 %v2488_v7, %v1782_v3  ;;  %v1662_v13 = vpop.f32.mrb[39].mxu1 }
 0x3c5   :  { %v1815_v15 = vadd.f32 %v1778_v8, %v1662_v13  ;;  %v1879_v13 = vand.u32 127, %v1706_v48 }
 0x3c6   :  { %v1824_v18 = vmax.f32 %v1816_v11, 0.0 }
 0x3c7   :  { %v1823_v21 = vmax.f32 %v1815_v15, 0.0 }
 0x3c8   :  { %v1839_v23 = vmul.f32 %v2175_v16, %v1824_v18  ;;  %v3068_v18 = vsub.s32 %v1879_v13, %v3017_v50 }
 0x3c9   :  { %v1838_v19 = vmul.f32 %v2175_v16, %v1823_v21 }
 0x3ca   :  { %v1849_v24 = vsel %vm162_vm0, %v1839_v23, 0.0 }
 0x3cb   :  { %1850 = vadd.xlane.f32.xlu0 %v1849_v24  ;;  %v2491_v51 = vpop.f32.mrb[40].mxu1  ;;  %v1846_v27 = vsel %vm162_vm0, %v1838_v19, 0.0 }
 0x3cc   :  { %v1818_v44 = vadd.f32 %v2491_v51, %v1790_v25  ;;  %v1672_v60 = vpop.f32.mrb[41].mxu1 }
 0x3cd   :  { %v1817_v62 = vadd.f32 %v1786_v37, %v1672_v60 }
 0x3ce   :  { %v1826_v26 = vmax.f32 %v1818_v44, 0.0 }
 0x3cf   :  { %v1825_v30 = vmax.f32 %v1817_v62, 0.0  ;;  %1847 = vadd.xlane.f32.xlu0 %v1846_v27 }
 0x3d0   :  { %v1841_v32 = vmul.f32 %v2175_v16, %v1826_v26 }
 0x3d1   :  { %v1840_v35 = vmul.f32 %v2175_v16, %v1825_v30  ;;  %v2620_v30 = vmov 0  }
 0x3d2   :  { %v1855_v33 = vsel %vm162_vm0, %v1841_v32, 0.0  ;;  %2575 = vset.pattern.permute.xlu1 %v2620_v30  ;;  %2574 = vset.pattern.permute.xlu0 %v2620_v30  ;;  %v1935_v32 = vsub.s32 2, %v3017_v50 }
 0x3d3   :  { %1856 = vadd.xlane.f32.xlu1 %v1855_v33  ;;  %v2494_v38 = vpop.f32.mrb[42].mxu1  ;;  %v1852_v5 = vsel %vm162_vm0, %v1840_v35, 0.0 }
 0x3d4   :  { %v1820_v43 = vadd.f32 %v2494_v38, %v1798_v34  ;;  %v1682_v4 = vpop.f32.mrb[43].mxu1 }
 0x3d5   :  { %v1819_v46 = vadd.f32 %v1794_v39, %v1682_v4  ;;  %v1939_v39 = vsub.s32 3, %v3017_v50  ;;  %v1943_v4 = vsub.s32 4, %v3017_v50 }
 0x3d6   :  { %v1828_v47 = vmax.f32 %v1820_v43, 0.0 }
 0x3d7   :  { %v1827_v52 = vmax.f32 %v1819_v46, 0.0  ;;  %1853 = vadd.xlane.f32.xlu1 %v1852_v5 }
 0x3d8   :  { %v1843_v55 = vmul.f32 %v2175_v16, %v1828_v47  ;;  %v1947_v47 = vsub.s32 5, %v3017_v50 }
 0x3d9   :  { %v1842_v56 = vmul.f32 %v2175_v16, %v1827_v52  ;;  %v1951_v52 = vsub.s32 6, %v3017_v50 }
 0x3da   :  { %v1861_v57 = vsel %vm162_vm0, %v1843_v55, 0.0 }
 0x3db   :  { %1862 = vadd.xlane.f32.xlu1 %v1861_v57  ;;  %v2497_v59 = vpop.f32.mrb[44].mxu1  ;;  %v1858_v63 = vsel %vm162_vm0, %v1842_v56, 0.0  ;;  %v1955_v56 = vsub.s32 7, %v3017_v50 }
 0x3dc   :  { %v1822_v1 = vadd.f32 %v2497_v59, %v1806_v58  ;;  %1859 = vadd.xlane.f32.xlu0 %v1858_v63  ;;  %v1692_v2 = vpop.f32.mrb[45].mxu1 }
 0x3dd   :  { %v1821_v3 = vadd.f32 %v1802_v0, %v1692_v2 }
 0x3de   :  { %v1830_v6 = vmax.f32 %v1822_v1, 0.0 }
 0x3df   :  { %v1829_v12 = vmax.f32 %v1821_v3, 0.0 }
 0x3e0   :  { %v1845_v7 = vmul.f32 %v2175_v16, %v1830_v6 }
 0x3e1   :  { %v1844_v8 = vmul.f32 %v2175_v16, %v1829_v12 }
 0x3e2   :  { %v1867_v9 = vsel %vm162_vm0, %v1845_v7, 0.0 }
 0x3e3   :  { %1868 = vadd.xlane.f32.xlu1 %v1867_v9  ;;  %v1864_v11 = vsel %vm162_vm0, %v1844_v8, 0.0 }
 0x3e4   :  { %1865 = vadd.xlane.f32.xlu0 %v1864_v11 }
 0x3f4   :  { %1974 = vbcast.lane.b32.xlu1 %v1879_v13, 256 }
 0x458   :  { %v1851_v14 = vpop.xlane.xlu0 %1850 }
 0x459   :  { %v1887_v22 = vrot.slane %v1851_v14, %v3068_v18 }
 0x45c   :  { %v1848_v17 = vpop.xlane.xlu0 %1847 }
 0x45d   :  { %v1883_v21 = vrot.slane %v1848_v17, %v3068_v18 }
 0x45f   :  { %v1912_v24 = vsel %vm882_vm2, %v1887_v22, %v1883_v21 }
 0x460   :  { %v1857_v15 = vpop.xlane.xlu1 %1856 }
 0x461   :  { %v1895_v28 = vrot.slane %v1857_v15, %v3068_v18 }
 0x464   :  { %v1854_v20 = vpop.xlane.xlu1 %1853 }
 0x465   :  { %v1891_v16 = vrot.slane %v1854_v20, %v3068_v18 }
 0x467   :  { %v1913_v25 = vsel %vm884_vm3, %v1891_v16, %v1912_v24 }
 0x468   :  { %v1863_v48 = vpop.xlane.xlu1 %1862  ;;  %v1914_v40 = vsel %vm886_vm4, %v1895_v28, %v1913_v25 }
 0x469   :  { %v1860_v23 = vpop.xlane.xlu0 %1859  ;;  %v1903_v53 = vrot.slane %v1863_v48, %v3068_v18 }
 0x46a   :  { %v1899_v19 = vrot.slane %v1860_v23, %v3068_v18 }
 0x46c   :  { %v1915_v51 = vsel %vm888_vm5, %v1899_v19, %v1914_v40 }
 0x46d   :  { %v1916_v62 = vsel %vm890_vm6, %v1903_v53, %v1915_v51 }
 0x470   :  { %v1869_v37 = vpop.xlane.xlu1 %1868 }
 0x471   :  { %v1866_v44 = vpop.xlane.xlu0 %1865  ;;  %v1911_v61 = vrot.slane %v1869_v37, %v3068_v18 }
 0x472   :  { %v1907_v60 = vrot.slane %v1866_v44, %v3068_v18 }
 0x474   :  { %v1917_v26 = vsel %vm892_vm7, %v1907_v60, %v1916_v62  ;;  %v1975_v34 = vpop.permute.xlu1 %1974 }
 0x475   :  { %v1918_v27 = vsel %vm894_vm8, %v1911_v61, %v1917_v26 }
 0x476   :  { %v1921_v29 = vsel %vm1920_vm9, %v1918_v27, -inf }
 0x477   :  { %1922 = vmax.xlane.f32.xlu0 %v1921_v29 }
 0x504   :  { %v1923_v33 = vpop.xlane.xlu0 %1922 }
 0x505   :  { %v1932_v35 = vrot.slane %v1923_v33, %v1931_v31  ;;  %v1928_v36 = vrot.slane %v1923_v33, %v3027_v10  ;;  %v1936_v38 = vrot.slane %v1923_v33, %v1935_v32  ;;  %v1940_v43 = vrot.slane %v1923_v33, %v1939_v39 }
 0x506   :  { %v2067_v45 = vrot.slane %v1923_v33, %v3068_v18  ;;  %v1944_v10 = vrot.slane %v1923_v33, %v1943_v4  ;;  %v1948_v49 = vrot.slane %v1923_v33, %v1947_v47  ;;  %v1952_v55 = vrot.slane %v1923_v33, %v1951_v52 }
 0x507   :  { %vm1966_vm10 = vcmp.ge.f32.partialorder %v1851_v14, %v1932_v35  ;;  %vm1965_vm11 = vcmp.ge.f32.partialorder %v1848_v17, %v1928_v36  ;;  %vm1967_vm12 = vcmp.ge.f32.partialorder %v1854_v20, %v1936_v38  ;;  %vm1968_vm14 = vcmp.ge.f32.partialorder %v1857_v15, %v1940_v43 }
 0x508   :  { %v1977_v41 = vsel %vm1966_vm10, %v1975_v34, 8  ;;  %v1976_v42 = vsel %vm1965_vm11, %v1975_v34, 8  ;;  %v1978_v46 = vsel %vm1967_vm12, %v1975_v34, 8  ;;  %2070 = vst.msk [vmem:[%s3138_s9] sm:$0x1] %vm2069_vm13, %v2067_v45  ;;  %v1979_v5 = vsel %vm1968_vm14, %v1975_v34, 8 }
 0x509   :  { %1988 = vperm.xlu1 %2575, %v1977_v41   ;;  %1985 = vperm.xlu0 %2574, %v1976_v42   ;;  %vm1969_vm15 = vcmp.ge.f32.partialorder %v1860_v23, %v1944_v10  ;;  %vm1970_vm0 = vcmp.ge.f32.partialorder %v1863_v48, %v1948_v49  ;;  %vm1971_vm1 = vcmp.ge.f32.partialorder %v1866_v44, %v1952_v55  ;;  %s2621_s9 = smov [#allocation2]  }
 0x50a   :  { %v1980_v54 = vsel %vm1969_vm15, %v1975_v34, 8  ;;  %v1981_v57 = vsel %vm1970_vm0, %v1975_v34, 8  ;;  %v1956_v58 = vrot.slane %v1923_v33, %v1955_v56  ;;  %v1982_v59 = vsel %vm1971_vm1, %v1975_v34, 8  ;;  %s2084_s23 = sshll.u32 %s2621_s9, 4  ;;  %s2085_s23 = int_to_ptr.vmem [resolvable:$true] %s2084_s23 }
 0x50b   :  { %s2592_s24 = scalar_lea.vmem %s2085_s23, 16  ;;  %s2596_s25 = scalar_lea.vmem %s2085_s23, 32 }
 0x50c   :  { %vm1972_vm10 = vcmp.ge.f32.partialorder %v1869_v37, %v1956_v58  ;;  %p2593_p0 = scmp.ne.s32.totalorder %s2085_s23, %s2592_s24  ;;  %p2597_p1 = scmp.lt.s32.totalorder %s2085_s23, %s2085_s23 }
 0x50d   :  { %1991 = vperm.xlu1 %2575, %v1978_v46   ;;  %v1983_v63 = vsel %vm1972_vm10, %v1975_v34, 8  ;;  %p2598_p2 = scmp.lt.s32.totalorder %s2596_s25, %s2592_s24 }
 0x50f   :  { %p2599_p3 = por %p2598_p2, %p2597_p1 }
 0x511   :  { %1994 = vperm.xlu1 %2575, %v1979_v5   ;;  %p2600_p4 = pnand %p2599_p3, %p2593_p0 }
 0x515   :  { %1997 = vperm.xlu1 %2575, %v1980_v54  }
 0x519   :  { %2000 = vperm.xlu1 %2575, %v1981_v57  }
 0x51d   :  { %2003 = vperm.xlu1 %2575, %v1982_v59  }
 0x521   :  { %2006 = vperm.xlu1 %2575, %v1983_v63  }
 0x588   :  { %v1989_v0 = vpop.permute.xlu1 %1988  ;;  %v1986_v6 = vpop.permute.xlu0 %1985 }
 0x589   :  { %v2015_v7 = vrot.slane %v1989_v0, %v3068_v18  ;;  %v2011_v8 = vrot.slane %v1986_v6, %v3068_v18 }
 0x58b   :  { %v2040_v14 = vsel %vm882_vm2, %v2015_v7, %v2011_v8 }
 0x58c   :  { %v1992_v1 = vpop.permute.xlu1 %1991 }
 0x58d   :  { %v2019_v50 = vrot.slane %v1992_v1, %v3068_v18 }
 0x58f   :  { %v2041_v17 = vsel %vm884_vm3, %v2019_v50, %v2040_v14 }
 0x590   :  { %v1995_v2 = vpop.permute.xlu1 %1994 }
 0x591   :  { %v2023_v9 = vrot.slane %v1995_v2, %v3068_v18 }
 0x593   :  { %v2042_v21 = vsel %vm886_vm4, %v2023_v9, %v2041_v17 }
 0x594   :  { %v1998_v3 = vpop.permute.xlu1 %1997 }
 0x595   :  { %v2027_v11 = vrot.slane %v1998_v3, %v3068_v18 }
 0x597   :  { %v2043_v16 = vsel %vm888_vm5, %v2027_v11, %v2042_v21 }
 0x598   :  { %v2001_v12 = vpop.permute.xlu1 %2000 }
 0x599   :  { %v2031_v15 = vrot.slane %v2001_v12, %v3068_v18 }
 0x59b   :  { %v2044_v23 = vsel %vm890_vm6, %v2031_v15, %v2043_v16 }
 0x59c   :  { %v2004_v13 = vpop.permute.xlu1 %2003 }
 0x59d   :  { %v2035_v20 = vrot.slane %v2004_v13, %v3068_v18 }
 0x59f   :  { %v2045_v25 = vsel %vm892_vm7, %v2035_v20, %v2044_v23 }
 0x5a0   :  { %v2007_v22 = vpop.permute.xlu1 %2006 }
 0x5a1   :  { %v2039_v24 = vrot.slane %v2007_v22, %v3068_v18 }
 0x5a3   :  { %v2046_v48 = vsel %vm894_vm8, %v2039_v24, %v2045_v25 }
 0x5a4   :  { %v2047_v19 = vsel %vm1920_vm9, %v2046_v48, 2147483647 }
 0x5a5   :  { %v2049_v28 = vshra.s32 %v2047_v19, 16  ;;  %v2048_v51 = vand.u32 65535, %v2047_v19 }
 0x5a7   :  { %v2051_v40 = vcvt.s32.f32 %v2049_v28  ;;  %v2050_v53 = vcvt.s32.f32 %v2048_v51 }
 0x5a9   :  { %2052 = vmin.xlane.f32.xlu1 %v2051_v40 }
 0x636   :  { %v2053_v37 = vpop.xlane.xlu1 %2052 }
 0x637   :  { %vm2054_vm2 = vcmp.eq.f32.partialorder %v2051_v40, %v2053_v37  ;;  %v2059_v60 = vcvt.f32.s32 %v2053_v37 }
 0x638   :  { %v2055_v44 = vsel %vm2054_vm2, %v2050_v53, inf }
 0x639   :  { %2056 = vmin.xlane.f32.xlu0 %v2055_v44  ;;  %v2060_v62 = vshll.u32 %v2059_v60, 16 }
 0x6c6   :  { %v2057_v61 = vpop.xlane.xlu0 %2056 }
 0x6c7   :  { %v2058_v26 = vcvt.f32.s32 %v2057_v61 }
 0x6c9   :  { %v2061_v27 = vadd.s32 %v2060_v62, %v2058_v26 }
 0x6cb   :  { %vm2062_vm3 = vcmp.lt.s32.totalorder %v2061_v27, 7 }
 0x6cc   :  { %v2063_v29 = vsel %vm2062_vm3, %v2061_v27, 7 }
 0x6cd   :  { %v2074_v30 = vrot.slane %v2063_v29, %v3068_v18 }
 0x6cf   :  { %2075 = vst.msk [vmem:[#allocation2] sm:$0x1] %vm2069_vm13, %v2074_v30 }
 0x6d0   :  { %2603 = shalt.err (!%p2600_p4)
}
 0x6d1   :  { %s2604_s27 = scalar_lea.hbm %s3139_s10, 16 }
 0x6d2   :  { %p2605_p5 = scmp.ne.s32.totalorder %s3139_s10, %s2604_s27  ;;  %p2608_p6 = scmp.lt.u32.totalorder %s2604_s27, %s3139_s10 }
 0x6d4   :  { %p2610_p7 = pnand %p2608_p6, %p2605_p5 }
 0x6d6   :  { %2613 = shalt.err (!%p2610_p7)
}
 0x6d7   :  { %2087 = dma.vmem_to_hbm [thread:$0]  %s2085_s23, 16, %s3139_s10, [#allocation3]  }
 0x6d8   :  { %2614 = dma.done.wait [#allocation3], 16  }
 0x6d9   :  { %2615 = vsyncadd [#allocation3], 4294967280 }
 0x6da   :  { %2093 = vsyncpa [#allocation3], 1 }

</bundles_post_ra>
